<compile_context>
chip_gen: v6e
topology: v6e:2x2x1
jax: 0.10.0
libtpu: 0.0.40
codegen_flags: <defaults>
</compile_context>

<pallas_src>
import math

import jax
import jax.numpy as jnp
from jax.experimental import pallas as pl
from jax.experimental.pallas import tpu as pltpu

_LANES = 128
_SUBLANES = 8
# (1, 4096, 128) f32 = 2 MiB per input per pipeline buffer; 2 inputs x 2 buffers
# = 8 MiB, safe on every generation (v5e 16 MiB default scoped VMEM) while
# amortizing the ~0.35 us/step pipeline overhead on v6e/v7x HBM bandwidth.
_MAX_ROW_TILE = 4096


def _choose_row_tile(rows, cap):
    """Pick a row tile. Returns (tr, needs_tail_mask). `rows` is a multiple of 8."""
    if rows <= cap:
        return rows, False
    # Largest multiple-of-8 divisor of `rows` that is <= cap (no mask needed).
    r8 = rows // _SUBLANES
    best = _SUBLANES
    for d in range(1, cap // _SUBLANES + 1):
        if r8 % d == 0:
            best = _SUBLANES * d
    if best >= cap // 2:
        return best, False
    # No good divisor: use the cap and mask only the overhanging last tile.
    return cap, True


def _make_iou_kernel(rows, tr, kt, needs_tail_mask):
    """Kernel over grid (G, KT): per-image sum(p*t) and sum(p+t), finalize IoU."""

    def kernel(pred_ref, target_ref, out_ref, acc_and_ref, acc_or_ref):
        k = pl.program_id(1)

        @pl.when(k == 0)
        def _init():
            acc_and_ref[...] = jnp.zeros_like(acc_and_ref)
            acc_or_ref[...] = jnp.zeros_like(acc_or_ref)

        def _accumulate(mask_tail):
            # Cast in-kernel (free on the VPU); wrapper streams native dtype.
            p = pred_ref[0].astype(jnp.float32)    # (tr, 128)
            t = target_ref[0].astype(jnp.float32)  # (tr, 128)
            prod = p * t   # intersection term
            both = p + t   # fused sum(p) + sum(t)
            if mask_tail:
                rid = jax.lax.broadcasted_iota(jnp.int32, (tr, _LANES), 0)
                valid = (k * tr + rid) < rows
                prod = jnp.where(valid, prod, 0.0)
                both = jnp.where(valid, both, 0.0)
            # Sublane-aligned reduce: each (8,128) chunk is one vreg, so the
            # axis-0 sum is pure VPU adds; the XLU reduce is deferred to finalize.
            prod = prod.reshape(tr // _SUBLANES, _SUBLANES, _LANES)
            both = both.reshape(tr // _SUBLANES, _SUBLANES, _LANES)
            acc_and_ref[...] += jnp.sum(prod, axis=0)
            acc_or_ref[...] += jnp.sum(both, axis=0)

        if needs_tail_mask:
            @pl.when(k < kt - 1)
            def _steady():
                _accumulate(False)

            @pl.when(k == kt - 1)
            def _tail():
                _accumulate(True)
        else:
            _accumulate(False)

        @pl.when(k == kt - 1)
        def _finalize():
            iand = jnp.sum(acc_and_ref[...])
            ior = jnp.sum(acc_or_ref[...]) - iand
            loss = 1.0 - iand / ior  # exact divide, once per image
            out_ref[...] = jnp.broadcast_to(loss, out_ref.shape).astype(out_ref.dtype)

    return kernel


def _iou_losses_sum(pred2d, target2d):
    """Fused IoU: pred2d/target2d are (G, n); returns sum_g (1 - IoU_g) as f32."""
    assert pred2d.shape == target2d.shape
    g, n = pred2d.shape

    rows = (n + _LANES - 1) // _LANES
    rows = ((rows + _SUBLANES - 1) // _SUBLANES) * _SUBLANES
    padded_n = rows * _LANES

    def _prep(x):
        if padded_n != n:
            # Ragged tail only: zero padding is neutral for both sums.
            x = jnp.pad(x, ((0, 0), (0, padded_n - n)))
        return jnp.reshape(x, (g, rows, _LANES))

    pred_r = _prep(pred2d)
    target_r = _prep(target2d)

    tr, needs_tail_mask = _choose_row_tile(rows, _MAX_ROW_TILE)
    kt = (rows + tr - 1) // tr

    kernel = _make_iou_kernel(rows, tr, kt, needs_tail_mask)

    per_image = pl.pallas_call(
        kernel,
        out_shape=jax.ShapeDtypeStruct((g, 1, _LANES), jnp.float32),
        grid_spec=pltpu.PrefetchScalarGridSpec(
            num_scalar_prefetch=0,
            grid=(g, kt),
            in_specs=[
                pl.BlockSpec((1, tr, _LANES), lambda i, k: (i, k, 0)),
                pl.BlockSpec((1, tr, _LANES), lambda i, k: (i, k, 0)),
            ],
            out_specs=pl.BlockSpec((1, 1, _LANES), lambda i, k: (i, 0, 0)),
            scratch_shapes=[
                pltpu.VMEM((_SUBLANES, _LANES), jnp.float32),  # sum(p * t) partials
                pltpu.VMEM((_SUBLANES, _LANES), jnp.float32),  # sum(p + t) partials
            ],
        ),
        compiler_params=pltpu.CompilerParams(
            dimension_semantics=("parallel", "arbitrary"),
        ),
    )(pred_r, target_r)

    # Each image's loss is replicated across the 128 lanes; take lane 0.
    return jnp.sum(per_image[:, 0, 0])


def iou_loss(pred, target):
    """Pallas implementation of IoULoss.forward: sum_i (1 - IoU_i) over the batch."""
    assert pred.shape == target.shape
    b = pred.shape[0]
    n = math.prod(pred.shape[1:])
    return _iou_losses_sum(jnp.reshape(pred, (b, n)), jnp.reshape(target, (b, n)))


def patch_iou_loss(pred, target):
    """Pallas implementation of PatchIoULoss.forward(pred, target).

    Mirrors the PyTorch reference exactly: anchors range over target.shape[0]
    and target.shape[1] with stride win_y, while the slices are taken on the
    spatial dims (with numpy-style clamping).  All patches of identical window
    shape plus the batch run through a single fused pallas_call.
    """
    win_y, win_x = (64, 64)
    b, c, h, w = target.shape

    anchors = [(ay, ax)
               for ay in range(0, target.shape[0], win_y)
               for ax in range(0, target.shape[1], win_y)]  # win_y stride, as in the reference

    # Group anchors by clamped spatial window shape so each group is uniform.
    groups = {}
    for ay, ax in anchors:
        hy = max(0, min(ay + win_y, h) - min(ay, h))
        wx = max(0, min(ax + win_x, w) - min(ax, w))
        groups.setdefault((hy, wx), []).append((ay, ax))

    total = jnp.float32(0.0)
    for (hy, wx), group in groups.items():
        p_cnt = len(group)
        if hy == 0 or wx == 0:
            # Empty patch: reference computes 1 - 0/0 = NaN per image; mirror it.
            total = total + jnp.float32(float("nan"))
            continue
        if p_cnt == 1 and (hy, wx) == (h, w):
            # Single anchor covering the whole image: no slice, no copy.
            pp = jnp.reshape(pred, (b, c * h * w))
            tt = jnp.reshape(target, (b, c * h * w))
        else:
            # One batched "patchify" copy for all anchors of this group.
            pp = jnp.stack([pred[:, :, ay:ay + hy, ax:ax + wx] for (ay, ax) in group])
            tt = jnp.stack([target[:, :, ay:ay + hy, ax:ax + wx] for (ay, ax) in group])
            pp = jnp.reshape(pp, (p_cnt * b, c * hy * wx))
            tt = jnp.reshape(tt, (p_cnt * b, c * hy * wx))
        total = total + _iou_losses_sum(pp, tt)
    return total


# ---------------- pure-JAX references (mirror the PyTorch code) ----------------

def _iou_loss_ref(pred, target):
    b = pred.shape[0]
    total = jnp.float32(0.0)
    for i in range(b):
        iand = jnp.sum(target[i] * pred[i])
        ior = jnp.sum(target[i]) + jnp.sum(pred[i]) - iand
        total = total + (1.0 - iand / ior)
    return total


def _patch_iou_loss_ref(pred, target):
    win_y, win_x = (64, 64)
    total = jnp.float32(0.0)
    for anchor_y in range(0, target.shape[0], win_y):
        for anchor_x in range(0, target.shape[1], win_y):
            pp = pred[:, :, anchor_y:anchor_y + win_y, anchor_x:anchor_x + win_x]
            tt = target[:, :, anchor_y:anchor_y + win_y, anchor_x:anchor_x + win_x]
            total = total + _iou_loss_ref(pp, tt)
    return total


if __name__ == "__main__":
    key = jax.random.PRNGKey(0)
    k1, k2 = jax.random.split(key)
    B, C, H, W = 2, 4, 16, 16
    # Positive-valued "probability-like" maps, as typical for IoU loss inputs.
    pred = jax.random.uniform(k1, (B, C, H, W), dtype=jnp.float32)
    target = (jax.random.uniform(k2, (B, C, H, W)) > 0.5).astype(jnp.float32)

    out = jax.block_until_ready(patch_iou_loss(pred, target))
    ref = _patch_iou_loss_ref(pred, target)
    assert jnp.allclose(out, ref, rtol=1e-5, atol=1e-5), (out, ref)
    print("KERNEL_OK")
</pallas_src>

<mosaic_0001>
module attributes {stable_mosaic.version = 11 : i64} {
  func.func @kernel(%arg0: i32, %arg1: i32, %arg2: memref<1x8x128xf32, #tpu.memory_space<vmem>>, %arg3: memref<1x8x128xf32, #tpu.memory_space<vmem>>, %arg4: memref<1x1x128xf32, #tpu.memory_space<vmem>>, %arg5: memref<8x128xf32, #tpu.memory_space<vmem>>, %arg6: memref<8x128xf32, #tpu.memory_space<vmem>>) attributes {dimension_semantics = [#tpu.dimension_semantics<parallel>, #tpu.dimension_semantics<arbitrary>], iteration_bounds = array<i64: 2, 1>, scalar_prefetch = 0 : i64, scratch_operands = 2 : i64, tpu.core_type = #tpu.core_type<tc>, window_params = [{transform_indices = @transform_0, window_bounds = array<i64: 1, 8, 128>}, {transform_indices = @transform_1, window_bounds = array<i64: 1, 8, 128>}, {transform_indices = @transform_2, window_bounds = array<i64: 1, 1, 128>}]} {
    %c0_i32 = arith.constant 0 : i32
    %0 = arith.cmpi eq, %arg1, %c0_i32 : i32
    %1 = arith.extui %0 : i1 to i32
    %c0_i32_0 = arith.constant 0 : i32
    %2 = arith.cmpi ne, %1, %c0_i32_0 : i32
    scf.if %2 {
      %cst_17 = arith.constant 0.000000e+00 : f32
      %22 = vector.broadcast %cst_17 : f32 to vector<8x128xf32>
      %c0_18 = arith.constant 0 : index
      %c0_19 = arith.constant 0 : index
      %23 = vector.load %arg5[%c0_18, %c0_19] : memref<8x128xf32, #tpu.memory_space<vmem>>, vector<8x128xf32>
      tpu.vector_store %arg5[%c0_18, %c0_19], %22 {strides = array<i32>} : memref<8x128xf32, #tpu.memory_space<vmem>>, vector<8x128xf32>,
      %cst_20 = arith.constant 0.000000e+00 : f32
      %24 = vector.broadcast %cst_20 : f32 to vector<8x128xf32>
      %c0_21 = arith.constant 0 : index
      %c0_22 = arith.constant 0 : index
      %25 = vector.load %arg6[%c0_21, %c0_22] : memref<8x128xf32, #tpu.memory_space<vmem>>, vector<8x128xf32>
      tpu.vector_store %arg6[%c0_21, %c0_22], %24 {strides = array<i32>} : memref<8x128xf32, #tpu.memory_space<vmem>>, vector<8x128xf32>,
    } else {
    }
    %c0 = arith.constant 0 : index
    %c0_1 = arith.constant 0 : index
    %c0_2 = arith.constant 0 : index
    %3 = vector.load %arg2[%c0, %c0_1, %c0_2] : memref<1x8x128xf32, #tpu.memory_space<vmem>>, vector<1x8x128xf32>
    %4 = vector.shape_cast %3 : vector<1x8x128xf32> to vector<8x128xf32>
    %c0_3 = arith.constant 0 : index
    %c0_4 = arith.constant 0 : index
    %c0_5 = arith.constant 0 : index
    %5 = vector.load %arg3[%c0_3, %c0_4, %c0_5] : memref<1x8x128xf32, #tpu.memory_space<vmem>>, vector<1x8x128xf32>
    %6 = vector.shape_cast %5 : vector<1x8x128xf32> to vector<8x128xf32>
    %7 = arith.mulf %4, %6 : vector<8x128xf32>
    %8 = arith.addf %4, %6 : vector<8x128xf32>
    %9 = vector.shape_cast %7 : vector<8x128xf32> to vector<1x8x128xf32>
    %10 = vector.shape_cast %8 : vector<8x128xf32> to vector<1x8x128xf32>
    %c0_6 = arith.constant 0 : index
    %c0_7 = arith.constant 0 : index
    %11 = vector.load %arg5[%c0_6, %c0_7] : memref<8x128xf32, #tpu.memory_space<vmem>>, vector<8x128xf32>
    %cst = arith.constant dense<0.000000e+00> : vector<8x128xf32>
    %12 = vector.multi_reduction <add>, %9, %cst [0] : vector<1x8x128xf32> to vector<8x128xf32>
    %13 = arith.addf %11, %12 : vector<8x128xf32>
    %c0_8 = arith.constant 0 : index
    %c0_9 = arith.constant 0 : index
    %14 = vector.load %arg5[%c0_8, %c0_9] : memref<8x128xf32, #tpu.memory_space<vmem>>, vector<8x128xf32>
    tpu.vector_store %arg5[%c0_8, %c0_9], %13 {strides = array<i32>} : memref<8x128xf32, #tpu.memory_space<vmem>>, vector<8x128xf32>,
    %c0_10 = arith.constant 0 : index
    %c0_11 = arith.constant 0 : index
    %15 = vector.load %arg6[%c0_10, %c0_11] : memref<8x128xf32, #tpu.memory_space<vmem>>, vector<8x128xf32>
    %cst_12 = arith.constant dense<0.000000e+00> : vector<8x128xf32>
    %16 = vector.multi_reduction <add>, %10, %cst_12 [0] : vector<1x8x128xf32> to vector<8x128xf32>
    %17 = arith.addf %15, %16 : vector<8x128xf32>
    %c0_13 = arith.constant 0 : index
    %c0_14 = arith.constant 0 : index
    %18 = vector.load %arg6[%c0_13, %c0_14] : memref<8x128xf32, #tpu.memory_space<vmem>>, vector<8x128xf32>
    tpu.vector_store %arg6[%c0_13, %c0_14], %17 {strides = array<i32>} : memref<8x128xf32, #tpu.memory_space<vmem>>, vector<8x128xf32>,
    %c0_i32_15 = arith.constant 0 : i32
    %19 = arith.cmpi eq, %arg1, %c0_i32_15 : i32
    %20 = arith.extui %19 : i1 to i32
    %c0_i32_16 = arith.constant 0 : i32
    %21 = arith.cmpi ne, %20, %c0_i32_16 : i32
    scf.if %21 {
      %c0_17 = arith.constant 0 : index
      %c0_18 = arith.constant 0 : index
      %22 = vector.load %arg5[%c0_17, %c0_18] : memref<8x128xf32, #tpu.memory_space<vmem>>, vector<8x128xf32>
      %23 = vector.shape_cast %22 : vector<8x128xf32> to vector<1x8x128xf32>
      %cst_19 = arith.constant dense<0.000000e+00> : vector<1xf32>
      %24 = vector.multi_reduction <add>, %23, %cst_19 [1, 2] : vector<1x8x128xf32> to vector<1xf32>
      %25 = vector.shape_cast %24 : vector<1xf32> to vector<1x1x1xf32>
      %26 = vector.extract %25[0, 0, 0] : f32 from vector<1x1x1xf32>
      %c0_20 = arith.constant 0 : index
      %c0_21 = arith.constant 0 : index
      %27 = vector.load %arg6[%c0_20, %c0_21] : memref<8x128xf32, #tpu.memory_space<vmem>>, vector<8x128xf32>
      %28 = vector.shape_cast %27 : vector<8x128xf32> to vector<1x8x128xf32>
      %cst_22 = arith.constant dense<0.000000e+00> : vector<1xf32>
      %29 = vector.multi_reduction <add>, %28, %cst_22 [1, 2] : vector<1x8x128xf32> to vector<1xf32>
      %30 = vector.shape_cast %29 : vector<1xf32> to vector<1x1x1xf32>
      %31 = vector.extract %30[0, 0, 0] : f32 from vector<1x1x1xf32>
      %32 = arith.subf %31, %26 : f32
      %33 = arith.divf %26, %32 : f32
      %cst_23 = arith.constant 1.000000e+00 : f32
      %34 = arith.subf %cst_23, %33 : f32
      %35 = vector.broadcast %34 : f32 to vector<1x1x128xf32>
      %c0_24 = arith.constant 0 : index
      %c0_25 = arith.constant 0 : index
      %c0_26 = arith.constant 0 : index
      %36 = vector.load %arg4[%c0_24, %c0_25, %c0_26] : memref<1x1x128xf32, #tpu.memory_space<vmem>>, vector<1x1x128xf32>
      tpu.vector_store %arg4[%c0_24, %c0_25, %c0_26], %35 {strides = array<i32>} : memref<1x1x128xf32, #tpu.memory_space<vmem>>, vector<1x1x128xf32>,
    } else {
    }
    return
  }
  func.func @transform_0(%arg0: i32, %arg1: i32) -> (i32, i32, i32) {
    %c0_i32 = arith.constant 0 : i32
    %c0_i32_0 = arith.constant 0 : i32
    return %arg0, %arg1, %c0_i32 : i32, i32, i32
  }
  func.func @transform_1(%arg0: i32, %arg1: i32) -> (i32, i32, i32) {
    %c0_i32 = arith.constant 0 : i32
    %c0_i32_0 = arith.constant 0 : i32
    return %arg0, %arg1, %c0_i32 : i32, i32, i32
  }
  func.func @transform_2(%arg0: i32, %arg1: i32) -> (i32, i32, i32) {
    %c0_i32 = arith.constant 0 : i32
    %c0_i32_0 = arith.constant 0 : i32
    %c0_i32_1 = arith.constant 0 : i32
    return %arg0, %c0_i32, %c0_i32_0 : i32, i32, i32
  }
}

</mosaic_0001>

<bundles_post_ra>
// kernel: tpu_custom_call.1
= control target key start
LH: loop header
LB: loop body
LE: loop exit
PB: predicated region body
PF: predicated region fallthrough
CT: control target
= control target key end

     0   :  { %7 = vsyncpa [#allocation5], 0  ;;  %s791_s0 = inlined_call_operand.hbm [shape: f32[2,8,128], index: 0, kind: input, shape index: {}]   ;;  %s792_s1 = inlined_call_operand.hbm [shape: f32[2,8,128], index: 1, kind: input, shape index: {}]   ;;  %s793_s2 = inlined_call_operand.hbm [shape: f32[2,1,128], index: 2, kind: output, shape index: {}]  }
   0x1   :  { %9 = vsyncpa [#allocation5 + $0x1], 0 }
   0x2   :  { %10 = vsyncpa [#allocation8], 0 }
   0x3   :  { %12 = vsyncpa [#allocation8 + $0x1], 0 }
   0x4   :  { %13 = vsyncpa [#allocation6], 0 }
   0x5   :  { %15 = vsyncpa [#allocation6 + $0x1], 0  ;;  %s623_s9 = smov 0   ;;  %s625_s10 = smov 0  }
   0x6   :  { %s627_s11 = smov 0   ;;  %s629_s12 = smov 0  }
   0x7   :  { %s631_s13 = smov 0   ;;  %s633_s14 = smov 0  }
   0x8 LB: > { %s374_s15 = sadd.s32 4294967295, %s603_s14   ;;  %s375_s16 = sadd.s32 4294967294, %s603_s14   ;;  %s603_s14 = sphi %s633_s14, %s21_s14   ;;  %s599_s13 = sphi %s631_s13, %s805_s13   ;;  %s595_s12 = sphi %s629_s12, %s804_s12   ;;  %s591_s11 = sphi %s627_s11, %s803_s11   ;;  %s587_s10 = sphi %s625_s10, %s802_s10   ;;  %s583_s9 = sphi %s623_s9, %s801_s9  }
   0x9   : > { %s33_s17 = sadd.s32 1, %s599_s13  ;;  %s42_s18 = sadd.s32 1, %s591_s11 }
   0xa   : > { %p35_p0 = scmp.ge.s32.totalorder %s33_s17, 2  ;;  %p49_p1 = scmp.ne.s32.totalorder %s591_s11, %s587_s10 }
   0xb   : > { %p50_p2 = scmp.eq.s32.totalorder %s603_s14, 0  ;;  %p55_p3 = scmp.ne.s32.totalorder %s587_s10, %s583_s9 }
   0xc   : > { %s807_s17 = smov (%p35_p0, %s33_s17), 0  ;;  %p56_p5 = scmp.eq.s32.totalorder %s374_s15, 0 }
   0xd   : > { %p664_p4 = por %p50_p2, %p49_p1  ;;  %s37_s20 = ssub.s32 %s599_s13, %s807_s17 }
   0xe   : > { %p107_p6 = scmp.eq.s32.totalorder %s374_s15, 1  ;;  %p40_p7 = scmp.eq.s32.totalorder %s37_s20, 0 }
   0xf   : > { %p670_p8 = por %p56_p5, %p55_p3  ;;  %p113_p10 = scmp.eq.s32.totalorder %s375_s16, 1 }
  0x10   : > { %p674_p9 = por %p107_p6, %p49_p1  ;;  %p411_p13 = scmp.lt.s32.totalorder %s603_s14, 2 }
  0x11   : > { %s679_s23 = scalar_select %p40_p7, %s591_s11, %s42_s18  }
  0x12   : > { %p681_p11 = por %p113_p10, %p55_p3  ;;  %s688_s25 = sand.u32 1, %s591_s11  }
  0x13   : > { %s378_s26 = sshll.u32 %s688_s25, 3  ;;  %s379_s27 = sshll.u32 %s599_s13, 7 }
  0x14   : > { %s143_s30 = scalar_lea.hbm %s791_s0, %s379_s27  ;;  %s137_s3 = scalar_lea.vmem [#allocation4], %s378_s26 }
  0x15   : > { %s145_s4 = sshll.u32 %s137_s3, 4  ;;  %p697_p0 = pnand %p411_p13, %p664_p4  ;;  %s146_s4 = int_to_ptr.vmem [resolvable:$true] %s145_s4 }
  0x16   : > { %p382_p1 = scmp.ge.s32.totalorder %s603_s14, 1  ;;  %p169_p2 = scmp.lt.s32.totalorder %s603_s14, 3 }
  0x17   : > { %s134_s6 = scalar_lea.sflag [#allocation5], %s688_s25  ;;  %p465_p3 = pneg %p697_p0 }
  0x18   : > { %s476_s7 = scalar_lea.vmem %s146_s4, 128  ;;  %s605_s8 = smov [#allocation4]  }
  0x19   : > { %p477_p5 = scmp.ne.s32.totalorder %s146_s4, %s476_s7  ;;  %s481_s15 = sshll.u32 %s605_s8, 4  ;;  %s482_s15 = int_to_ptr.vmem [resolvable:$false] %s481_s15 }
  0x1a   : > { %s483_s16 = scalar_lea.vmem %s482_s15, 256  ;;  %p484_p4 = scmp.lt.s32.totalorder %s146_s4, %s482_s15 }
  0x1b   : > { %p479_p6 = pnand %p477_p5, %p465_p3  ;;  %p485_p10 = scmp.lt.s32.totalorder %s483_s16, %s476_s7 }
  0x1d   : > { %p480_p7 = pneg %p479_p6  ;;  %p486_p13 = por %p485_p10, %p484_p4 }
  0x1f   : > { %p487_p12 = pnand %p486_p13, %p480_p7 }
  0x21   : > { %490 = shalt.err (!%p487_p12)
}
  0x22   : > { %403 = dma.hbm_to_vmem [thread:$0]  (!%p697_p0), %s143_s30, 128, %s146_s4, %s134_s6  }
  0x23   : > { %p715_p5 = pnand %p382_p1, %p169_p2  ;;  %s162_s28 = scalar_lea.hbm %s792_s1, %s379_s27 }
  0x24   : > { %s156_s29 = scalar_lea.vmem [#allocation7], %s378_s26  ;;  %s153_s7 = scalar_lea.sflag [#allocation8], %s688_s25 }
  0x25   : > { %s164_s3 = sshll.u32 %s156_s29, 4  ;;  %s606_s30 = smov [#allocation7]   ;;  %s165_s3 = int_to_ptr.vmem [resolvable:$true] %s164_s3 }
  0x26   : > { %s504_s8 = scalar_lea.vmem %s165_s3, 128  ;;  %s509_s4 = sshll.u32 %s606_s30, 4  ;;  %s510_s4 = int_to_ptr.vmem [resolvable:$false] %s509_s4 }
  0x27   : > { %p505_p12 = scmp.ne.s32.totalorder %s165_s3, %s504_s8  ;;  %s511_s6 = scalar_lea.vmem %s510_s4, 256 }
  0x28   : > { %p512_p1 = scmp.lt.s32.totalorder %s165_s3, %s510_s4  ;;  %p513_p2 = scmp.lt.s32.totalorder %s511_s6, %s504_s8 }
  0x29   : > { %p507_p6 = pnand %p505_p12, %p465_p3 }
  0x2a   : > { %p514_p4 = por %p513_p2, %p512_p1 }
  0x2b   : > { %p508_p7 = pneg %p507_p6 }
  0x2d   : > { %p515_p10 = pnand %p514_p4, %p508_p7 }
  0x2f   : > { %518 = shalt.err (!%p515_p10)
}
  0x30   : > { %406 = dma.hbm_to_vmem [thread:$0]  (!%p697_p0), %s162_s28, 128, %s165_s3, %s153_s7  }
  0x31   : > { %173 = sbr.rel (%p715_p5) target bundleno = 349 (0x15d), region = 28  ;;  %s731_s25 = sand.u32 (!%p715_p5), 1, %s587_s10  }
  0x32   : > { %s383_s26 = sshll.u32 (!%p715_p5), %s731_s25, 3  ;;  %s176_s27 = scalar_lea.sflag (!%p715_p5), [#allocation5], %s731_s25 }
  0x33   : > { %s179_s15 = scalar_lea.vmem (!%p715_p5), [#allocation4], %s383_s26 }
  0x36   : > { %570 = dma.done.wait (%p670_p8), %s176_s27, 128  }
  0x37   : > { %572 = vsyncadd (%p670_p8), %s176_s27, 4294967168  ;;  %s185_s5 = scalar_lea.sflag [#allocation8], %s731_s25  ;;  %s188_s16 = scalar_lea.vmem [#allocation7], %s383_s26 }
  0x38   : > { %574 = dma.done.wait (%p670_p8), %s185_s5, 128  }
  0x39   : > { %576 = vsyncadd (%p670_p8), %s185_s5, 4294967168  ;;  %v219_v0 = vld [vmem:[%s179_s15] sm:$0xff]  ;;  %v220_v1 = vld [vmem:[%s188_s16] sm:$0xff]  ;;  %s385_s28 = sshll.u32 %s595_s12, 4  ;;  %s212_s3 = scalar_lea.vmem [#allocation9], %s731_s25 }
  0x3a   : > { %v221_v2 = vmul.f32 %v220_v1, %v219_v0  ;;  %v222_v3 = vadd.f32 %v220_v1, %v219_v0  ;;  %s275_s7 = sshll.u32 %s212_s3, 4  ;;  %s749_s6 = scalar_lea.hbm %s793_s2, %s385_s28  ;;  %s276_s7 = int_to_ptr.vmem [resolvable:$true] %s275_s7 }
  0x3b   : > { %s263_s26 = scalar_lea.sflag [#allocation6], %s731_s25  ;;  %s519_s27 = scalar_lea.vmem %s276_s7, 16 }
  0x3c   : > { %235 = vadd.xlane.f32.xlu0 %v221_v2  ;;  %p520_p8 = scmp.ne.s32.totalorder %s276_s7, %s519_s27  ;;  %s607_s15 = smov [#allocation9]  }
  0x3d   : > { %s523_s12 = sshll.u32 %s607_s15, 4  ;;  %s524_s12 = int_to_ptr.vmem [resolvable:$false] %s523_s12 }
  0x3e   : > { %p521_p0 = pnand %p520_p8, %p674_p9  ;;  %s525_s5 = scalar_lea.vmem %s524_s12, 32 }
  0x3f   : > { %p526_p13 = scmp.lt.s32.totalorder %s276_s7, %s524_s12  ;;  %p527_p5 = scmp.lt.s32.totalorder %s525_s5, %s519_s27 }
  0x40   : > { %245 = vadd.xlane.f32.xlu0 %v222_v3  ;;  %p522_p3 = pneg %p521_p0 }
  0x41   : > { %p528_p12 = por %p527_p5, %p526_p13 }
  0x43   : > { %p529_p6 = pnand %p528_p12, %p522_p3 }
  0xc5   : > { %v236_v4 = vpop.xlane.xlu0 %235 }
  0xc6   : > { %v237_v5 = vrot.slane %v236_v4, 4 }
  0xc8   : > { %v238_v6 = vadd.f32 %v237_v5, %v236_v4 }
  0xc9   : > { %v246_v7 = vpop.xlane.xlu0 %245 }
  0xca   : > { %v239_v8 = vrot.slane %v238_v6, 2  ;;  %v247_v9 = vrot.slane %v246_v7, 4 }
  0xcc   : > { %v248_v10 = vadd.f32 %v247_v9, %v246_v7  ;;  %v240_v11 = vadd.f32 %v239_v8, %v238_v6 }
  0xce   : > { %v249_v12 = vrot.slane %v248_v10, 2  ;;  %v241_v13 = vrot.slane %v240_v11, 1 }
  0xd0   : > { %v250_v14 = vadd.f32 %v249_v12, %v248_v10  ;;  %v242_v15 = vadd.f32 %v241_v13, %v240_v11 }
  0xd2   : > { %388 = vpush %v242_v15  ;;  %v251_v16 = vrot.slane %v250_v14, 1 }
  0xd4   : > { %v252_v17 = vadd.f32 %v251_v16, %v250_v14 }
  0xd6   : > { %390 = vpush %v252_v17 }
 0x103   : > { %s389_s21 = spop %388 }
 0x107   : > { %s391_s18 = spop %390 }
 0x108   : > { %s254_s19 = ssub.f32 %s391_s18, %s389_s21 }
 0x10a   : > { %v255_v18 = vstv %s254_s19 }
 0x10b   : > { %461 = vrcp.f32 %v255_v18 }
 0x118   : > { %v462_v19 = vpop.eup %461 }
 0x119   : > { %392 = vpush %v462_v19 }
 0x14a   : > { %s393_s20 = spop %392 }
 0x14b   : > { %s258_s29 = smul.f32 %s393_s20, %s389_s21 }
 0x14d   : > { %s259_s8 = ssub.f32 1.0, %s258_s29 }
 0x14f   : > { %v260_v20 = vstv %s259_s8 }
 0x150   : > { %261 = vst [vmem:[%s212_s3] sm:$0x1] %v260_v20 }
 0x151   : > { %532 = shalt.err (!%p529_p6)
}
 0x152   : > { %s533_s16 = scalar_lea.hbm %s749_s6, 16  ;;  %s537_s18 = scalar_lea.hbm %s793_s2, 32 }
 0x153   : > { %p534_p7 = scmp.ne.s32.totalorder %s749_s6, %s533_s16  ;;  %p538_p4 = scmp.lt.s32.totalorder %s749_s6, %s793_s2 }
 0x154   : > { %p539_p10 = scmp.lt.s32.totalorder %s537_s18, %s533_s16 }
 0x155   : > { %p535_p1 = pnand %p534_p7, %p674_p9 }
 0x156   : > { %p540_p8 = por %p539_p10, %p538_p4 }
 0x157   : > { %p536_p2 = pneg %p535_p1 }
 0x159   : > { %p541_p0 = pnand %p540_p8, %p536_p2 }
 0x15b   : > { %544 = shalt.err (!%p541_p0)
}
 0x15c   : > { %398 = dma.vmem_to_hbm [thread:$0]  (%p674_p9), %s276_s7, 16, %s749_s6, %s263_s26  }
 0x15d PF: > { %s287_s28 = sand.u32 1, %s583_s9   ;;  %p800_p3 = scmp.ge.s32.totalorder %s603_s14, 2 }
 0x15e   : > { %s288_s29 = scalar_lea.sflag [#allocation6], %s287_s28 }
 0x15f   : > { %p408_p13 = pnand %p800_p3, %p681_p11 }
 0x161   : > { %p409_p5 = pneg %p408_p13 }
 0x163   : > { %578 = dma.done.wait (%p409_p5), %s288_s29, 16  }
 0x164   : > { %580 = vsyncadd (%p409_p5), %s288_s29, 4294967280  ;;  %s21_s14 = sadd.s32 1, %s603_s14   ;;  %s801_s9 = smov %s587_s10 }
 0x165   : > { %p18_p12 = scmp.ge.s32.totalorder %s21_s14, 4   ;;  %s802_s10 = smov %s591_s11 }
 0x166   : > { %s803_s11 = smov %s679_s23  ;;  %s804_s12 = smov %s599_s13 }
 0x167   : > { %s805_s13 = smov %s807_s17  ;;  %20 = sbr.rel (!%p18_p12) target bundleno = 8 (0x8), region = 94 }
 0x16c   :  { %292 = vsyncpa [#allocation5], 1 }
 0x16d   :  { %294 = vsyncpa [#allocation5 + $0x1], 1 }
 0x16e   :  { %295 = vsyncpa [#allocation8], 1 }
 0x16f   :  { %297 = vsyncpa [#allocation8 + $0x1], 1 }
 0x170   :  { %298 = vsyncpa [#allocation6], 1 }
 0x171   :  { %300 = vsyncpa [#allocation6 + $0x1], 1 }

</bundles_post_ra>
